<compile_context>
chip_gen: v5e
topology: v5e:2x2
jax: 0.10.0
libtpu: 0.0.40
codegen_flags: <defaults>
</compile_context>

<pallas_src>
import jax
import jax.numpy as jnp
from jax import lax
from jax.experimental import pallas as pl
from jax.experimental.pallas import tpu as pltpu


def _pick_col_tile(H: int) -> int:
    for t in (512, 256, 128):
        if H % t == 0:
            return t
    return H


def time_embedding_kernel(x_ref, w1_ref, b1_ref, w2_ref, b2_ref, o_ref):
    # Per grid step j (tile over linear_2 output columns):
    #   x : (B, 320)  f32   full, resident across the grid
    #   w1: (H, 320)  bf16  PyTorch (out, in) layout, full, resident
    #   b1: (1, H)    f32
    #   w2: (tn, H)   bf16  rows [j*tn : (j+1)*tn) of the (out, in) weight
    #   b2: (1, tn)   f32
    #   o : (B, tn)
    cdims = (((1,), (1,)), ((), ()))  # contract x's last dim with weight dim 1 (trans_b)

    x = x_ref[...].astype(w1_ref.dtype)
    h = lax.dot_general(x, w1_ref[...], cdims,
                        preferred_element_type=jnp.float32) + b1_ref[...]
    # SiLU in f32 (EUP sigmoid; keep f32 so v5e's no-bf16 VPU/EUP path is happy).
    h = h * jax.nn.sigmoid(h)
    out = lax.dot_general(h.astype(w2_ref.dtype), w2_ref[...], cdims,
                          preferred_element_type=jnp.float32) + b2_ref[...]
    o_ref[...] = out.astype(o_ref.dtype)


def prepare_time_embedding_params(w1, b1, w2, b2, weight_dtype=jnp.bfloat16):
    """One-time parameter prep (outside the hot path): bf16 weights, 2-D f32 biases.

    Weights keep the PyTorch (out_features, in_features) layout — no transpose ever.
    """
    H = w1.shape[0]
    return (w1.astype(weight_dtype),
            b1.reshape(1, H).astype(jnp.float32),
            w2.astype(weight_dtype),
            b2.reshape(1, H).astype(jnp.float32))


def time_embedding(time, params, col_tile=None):
    """time: (B, 320) f32; params: output of prepare_time_embedding_params."""
    w1_bf, b1_2d, w2_bf, b2_2d = params
    B, Din = time.shape
    H = w1_bf.shape[0]
    tn = _pick_col_tile(H) if col_tile is None else col_tile
    assert H % tn == 0

    return pl.pallas_call(
        time_embedding_kernel,
        out_shape=jax.ShapeDtypeStruct((B, H), time.dtype),
        grid_spec=pltpu.PrefetchScalarGridSpec(
            num_scalar_prefetch=0,
            grid=(H // tn,),
            in_specs=[
                pl.BlockSpec((B, Din), lambda j: (0, 0)),   # x (resident)
                pl.BlockSpec((H, Din), lambda j: (0, 0)),   # w1 (resident)
                pl.BlockSpec((1, H), lambda j: (0, 0)),     # b1 (resident)
                pl.BlockSpec((tn, H), lambda j: (j, 0)),    # w2 tile (streamed)
                pl.BlockSpec((1, tn), lambda j: (0, j)),    # b2 tile
            ],
            out_specs=pl.BlockSpec((B, tn), lambda j: (0, j)),
        ),
        compiler_params=pltpu.CompilerParams(
            dimension_semantics=("parallel",)),  # shards w2 stream across TCs on v7x
    )(time, w1_bf, b1_2d, w2_bf, b2_2d)


if __name__ == "__main__":
    # Small shapes: embedding_dim=32 -> hidden = 4*32 = 128; input features fixed at 320.
    embedding_dim = 32
    hidden = embedding_dim * 4        # 128
    batch = 8

    key = jax.random.PRNGKey(0)
    k_x, k_w1, k_b1, k_w2, k_b2 = jax.random.split(key, 5)

    # Deterministic parameter init (PyTorch-Linear-style uniform bounds).
    bound1 = 1.0 / (320.0 ** 0.5)
    bound2 = 1.0 / (hidden ** 0.5)
    w1 = jax.random.uniform(k_w1, (hidden, 320), jnp.float32, -bound1, bound1)
    b1 = jax.random.uniform(k_b1, (hidden,), jnp.float32, -bound1, bound1)
    w2 = jax.random.uniform(k_w2, (hidden, hidden), jnp.float32, -bound2, bound2)
    b2 = jax.random.uniform(k_b2, (hidden,), jnp.float32, -bound2, bound2)

    time = jax.random.normal(k_x, (batch, 320), jnp.float32)

    params = prepare_time_embedding_params(w1, b1, w2, b2)
    out = jax.block_until_ready(time_embedding(time, params))

    # Pure-JAX reference mimicking the bf16 weight/activation casts (f32 accumulation).
    w1_bf, b1_2d, w2_bf, b2_2d = params
    cdims = (((1,), (1,)), ((), ()))
    h_ref = lax.dot_general(time.astype(jnp.bfloat16), w1_bf, cdims,
                            preferred_element_type=jnp.float32) + b1_2d
    h_ref = h_ref * jax.nn.sigmoid(h_ref)
    ref = lax.dot_general(h_ref.astype(jnp.bfloat16), w2_bf, cdims,
                          preferred_element_type=jnp.float32) + b2_2d

    assert out.shape == (batch, hidden)
    assert jnp.allclose(out, ref, atol=1e-2, rtol=1e-2), "mismatch vs reference"

    print("KERNEL_OK")
</pallas_src>

<mosaic_0001>
module attributes {stable_mosaic.version = 11 : i64} {
  func.func @time_embedding_kernel(%arg0: i32, %arg1: memref<8x320xf32, #tpu.memory_space<vmem>>, %arg2: memref<128x320xbf16, #tpu.memory_space<vmem>>, %arg3: memref<1x128xf32, #tpu.memory_space<vmem>>, %arg4: memref<128x128xbf16, #tpu.memory_space<vmem>>, %arg5: memref<1x128xf32, #tpu.memory_space<vmem>>, %arg6: memref<8x128xf32, #tpu.memory_space<vmem>>) attributes {dimension_semantics = [#tpu.dimension_semantics<parallel>], iteration_bounds = array<i64: 1>, scalar_prefetch = 0 : i64, scratch_operands = 0 : i64, tpu.core_type = #tpu.core_type<tc>, window_params = [{pipeline_mode = #tpu.pipeline_mode<synchronous>, transform_indices = @transform_0, window_bounds = array<i64: 8, 320>}, {pipeline_mode = #tpu.pipeline_mode<synchronous>, transform_indices = @transform_1, window_bounds = array<i64: 128, 320>}, {pipeline_mode = #tpu.pipeline_mode<synchronous>, transform_indices = @transform_2, window_bounds = array<i64: 1, 128>}, {transform_indices = @transform_3, window_bounds = array<i64: 128, 128>}, {transform_indices = @transform_4, window_bounds = array<i64: 1, 128>}, {transform_indices = @transform_5, window_bounds = array<i64: 8, 128>}]} {
    %c0 = arith.constant 0 : index
    %c0_0 = arith.constant 0 : index
    %0 = vector.load %arg1[%c0, %c0_0] : memref<8x320xf32, #tpu.memory_space<vmem>>, vector<8x320xf32>
    %1 = arith.truncf %0 : vector<8x320xf32> to vector<8x320xbf16>
    %c0_1 = arith.constant 0 : index
    %c0_2 = arith.constant 0 : index
    %2 = vector.load %arg2[%c0_1, %c0_2] : memref<128x320xbf16, #tpu.memory_space<vmem>>, vector<128x320xbf16>
    %cst = arith.constant dense<0.000000e+00> : vector<8x128xf32>
    %3 = tpu.matmul %1, %2, %cst {dimension_numbers = #tpu.dot_dimension_numbers<[1], [1], [0], [0], [0, 0, 1, 0], [], []>} : vector<8x320xbf16>, vector<128x320xbf16>, vector<8x128xf32> -> vector<8x128xf32>
    %c0_3 = arith.constant 0 : index
    %c0_4 = arith.constant 0 : index
    %4 = vector.load %arg3[%c0_3, %c0_4] : memref<1x128xf32, #tpu.memory_space<vmem>>, vector<1x128xf32>
    %5 = vector.broadcast %4 : vector<1x128xf32> to vector<8x128xf32>
    %6 = arith.addf %3, %5 : vector<8x128xf32>
    %7 = arith.negf %6 : vector<8x128xf32>
    %8 = math.exp %7 : vector<8x128xf32>
    %cst_5 = arith.constant 1.000000e+00 : f32
    %9 = vector.broadcast %cst_5 : f32 to vector<8x128xf32>
    %10 = arith.addf %9, %8 : vector<8x128xf32>
    %11 = arith.divf %9, %10 : vector<8x128xf32>
    %12 = arith.mulf %6, %11 : vector<8x128xf32>
    %13 = arith.truncf %12 : vector<8x128xf32> to vector<8x128xbf16>
    %c0_6 = arith.constant 0 : index
    %c0_7 = arith.constant 0 : index
    %14 = vector.load %arg4[%c0_6, %c0_7] : memref<128x128xbf16, #tpu.memory_space<vmem>>, vector<128x128xbf16>
    %cst_8 = arith.constant dense<0.000000e+00> : vector<8x128xf32>
    %15 = tpu.matmul %13, %14, %cst_8 {dimension_numbers = #tpu.dot_dimension_numbers<[1], [1], [0], [0], [0, 0, 1, 0], [], []>} : vector<8x128xbf16>, vector<128x128xbf16>, vector<8x128xf32> -> vector<8x128xf32>
    %c0_9 = arith.constant 0 : index
    %c0_10 = arith.constant 0 : index
    %16 = vector.load %arg5[%c0_9, %c0_10] : memref<1x128xf32, #tpu.memory_space<vmem>>, vector<1x128xf32>
    %17 = vector.broadcast %16 : vector<1x128xf32> to vector<8x128xf32>
    %18 = arith.addf %15, %17 : vector<8x128xf32>
    %c0_11 = arith.constant 0 : index
    %c0_12 = arith.constant 0 : index
    %19 = vector.load %arg6[%c0_11, %c0_12] : memref<8x128xf32, #tpu.memory_space<vmem>>, vector<8x128xf32>
    tpu.vector_store %arg6[%c0_11, %c0_12], %18 {strides = array<i32>} : memref<8x128xf32, #tpu.memory_space<vmem>>, vector<8x128xf32>,
    return
  }
  func.func @transform_0(%arg0: i32) -> (i32, i32) {
    %c0_i32 = arith.constant 0 : i32
    %c0_i32_0 = arith.constant 0 : i32
    %c0_i32_1 = arith.constant 0 : i32
    return %c0_i32, %c0_i32_0 : i32, i32
  }
  func.func @transform_1(%arg0: i32) -> (i32, i32) {
    %c0_i32 = arith.constant 0 : i32
    %c0_i32_0 = arith.constant 0 : i32
    %c0_i32_1 = arith.constant 0 : i32
    return %c0_i32, %c0_i32_0 : i32, i32
  }
  func.func @transform_2(%arg0: i32) -> (i32, i32) {
    %c0_i32 = arith.constant 0 : i32
    %c0_i32_0 = arith.constant 0 : i32
    %c0_i32_1 = arith.constant 0 : i32
    return %c0_i32, %c0_i32_0 : i32, i32
  }
  func.func @transform_3(%arg0: i32) -> (i32, i32) {
    %c0_i32 = arith.constant 0 : i32
    %c0_i32_0 = arith.constant 0 : i32
    return %arg0, %c0_i32 : i32, i32
  }
  func.func @transform_4(%arg0: i32) -> (i32, i32) {
    %c0_i32 = arith.constant 0 : i32
    %c0_i32_0 = arith.constant 0 : i32
    return %c0_i32, %arg0 : i32, i32
  }
  func.func @transform_5(%arg0: i32) -> (i32, i32) {
    %c0_i32 = arith.constant 0 : i32
    %c0_i32_0 = arith.constant 0 : i32
    return %c0_i32, %arg0 : i32, i32
  }
}

</mosaic_0001>

<bundles_post_ra>
// kernel: tpu_custom_call.1
= control target key start
LH: loop header
LB: loop body
LE: loop exit
PB: predicated region body
PF: predicated region fallthrough
CT: control target
= control target key end

     0   :  { %vm183_vm0 = vcmask 523264   ;;  %s790_s0 = inlined_call_operand.vmem [shape: f32[8,320], index: 0, kind: input, shape index: {}]   ;;  %s791_s1 = inlined_call_operand.vmem [shape: bf16[128,320], index: 1, kind: input, shape index: {}]   ;;  %s792_s2 = inlined_call_operand.vmem [shape: f32[1,128], index: 2, kind: input, shape index: {}]   ;;  %s793_s3 = inlined_call_operand.vmem [shape: bf16[128,128], index: 3, kind: input, shape index: {}]   ;;  %s794_s4 = inlined_call_operand.vmem [shape: f32[1,128], index: 4, kind: input, shape index: {}]   ;;  %s795_s5 = inlined_call_operand.hbm [shape: f32[8,128], index: 5, kind: output, shape index: {}]  }
   0x1   :  { %v455_v0 = vld [vmem:[%s791_s1 + $0xa8] sm:$0xf]  ;;  %v521_v1 = vld [vmem:[%s791_s1 + $0xb0] sm:$0xf0]  ;;  %v520_v2 = vld [vmem:[%s791_s1 + $0xac] sm:$0xf] }
   0x2   :  { %v456_v3 = vor.u32 %v521_v1, %v455_v0  ;;  %v457_v4 = vld [vmem:[%s791_s1 + $0xb4] sm:$0xf0]  ;;  %v463_v5 = vld [vmem:[%s791_s1 + $0xb0] sm:$0xf]  ;;  %v522_v6 = vld [vmem:[%s791_s1 + $0xb8] sm:$0xf0] }
   0x3   :  { %v460_v7 = vor.u32 %v520_v2, %v457_v4  ;;  %v464_v8 = vor.u32 %v522_v6, %v463_v5  ;;  %v443_v9 = vld [vmem:[%s791_s1 + $0x90] sm:$0xf]  ;;  %v451_v10 = vld [vmem:[%s791_s1 + $0x98] sm:$0xf]  ;;  %v518_v12 = vld [vmem:[%s791_s1 + $0x98] sm:$0xf0] }
   0x4   :  { %211 = vmatpush.bf16.xpose.msra.mxu0 %v456_v3  ;;  %v519_v13 = vld [vmem:[%s791_s1 + $0xa0] sm:$0xf0]  ;;  %v517_v14 = vld [vmem:[%s791_s1 + $0x94] sm:$0xf]  ;;  %v445_v15 = vld [vmem:[%s791_s1 + $0x9c] sm:$0xf0]  ;;  %v444_v17 = vor.u32 %v518_v12, %v443_v9 }
   0x5   :  { %224 = vmatpush.bf16.xpose.msra.mxu1 %v460_v7  ;;  %v209_v11 = vsel %vm183_vm0, %v464_v8, 0  ;;  %v452_v16 = vor.u32 %v519_v13, %v451_v10  ;;  %v448_v18 = vor.u32 %v517_v14, %v445_v15  ;;  %v439_v20 = vld [vmem:[%s791_s1 + $0x80] sm:$0xf]  ;;  %v516_v21 = vld [vmem:[%s791_s1 + $0x88] sm:$0xf0] }
   0x6   :  { %237 = vmatpush.bf16.xpose.msra.mxu2 %v209_v11  ;;  %v431_v22 = vld [vmem:[%s791_s1 + $0x78] sm:$0xf]  ;;  %v515_v23 = vld [vmem:[%s791_s1 + $0x80] sm:$0xf0]  ;;  %v514_v24 = vld [vmem:[%s791_s1 + $0x7c] sm:$0xf]  ;;  %v440_v26 = vor.u32 %v516_v21, %v439_v20 }
   0x7   :  { %v206_v19 = vsel %vm183_vm0, %v452_v16, 0  ;;  %v433_v25 = vld [vmem:[%s791_s1 + $0x84] sm:$0xf0]  ;;  %v432_v27 = vor.u32 %v515_v23, %v431_v22 }
   0xc   :  { %212 = vmatpush.bf16.xpose.msra.mxu0 %v444_v17 }
   0xd   :  { %225 = vmatpush.bf16.xpose.msra.mxu1 %v448_v18 }
   0xe   :  { %238 = vmatpush.bf16.xpose.msra.mxu2 %v206_v19 }
   0xf   :  { %10 = vsyncpa [#allocation3], 0  ;;  %v436_v28 = vor.u32 %v514_v24, %v433_v25  ;;  %v203_v29 = vsel %vm183_vm0, %v440_v26, 0  ;;  %v427_v30 = vld [vmem:[%s791_s1 + $0x68] sm:$0xf]  ;;  %v530_v54 = vld [vmem:[%s793_s3 + $0x38] sm:$0xff] }
  0x10   :  { %v513_v31 = vld [vmem:[%s791_s1 + $0x70] sm:$0xf0]  ;;  %v419_v32 = vld [vmem:[%s791_s1 + $0x60] sm:$0xf]  ;;  %v512_v33 = vld [vmem:[%s791_s1 + $0x68] sm:$0xf0]  ;;  %339 = vmatpush.bf16.xpose.msra.mxu3 %v530_v54 }
  0x11   :  { %v511_v34 = vld [vmem:[%s791_s1 + $0x64] sm:$0xf]  ;;  %v421_v35 = vld [vmem:[%s791_s1 + $0x6c] sm:$0xf0]  ;;  %v428_v36 = vor.u32 %v513_v31, %v427_v30  ;;  %v420_v37 = vor.u32 %v512_v33, %v419_v32  ;;  %v510_v41 = vld [vmem:[%s791_s1 + $0x58] sm:$0xf0] }
  0x12   :  { %v424_v38 = vor.u32 %v511_v34, %v421_v35  ;;  %v415_v40 = vld [vmem:[%s791_s1 + $0x50] sm:$0xf]  ;;  %v407_v42 = vld [vmem:[%s791_s1 + $0x48] sm:$0xf]  ;;  %v509_v43 = vld [vmem:[%s791_s1 + $0x50] sm:$0xf0] }
  0x13   :  { %v200_v39 = vsel %vm183_vm0, %v428_v36, 0  ;;  %v508_v44 = vld [vmem:[%s791_s1 + $0x4c] sm:$0xf]  ;;  %v409_v45 = vld [vmem:[%s791_s1 + $0x54] sm:$0xf0]  ;;  %v416_v46 = vor.u32 %v510_v41, %v415_v40  ;;  %v408_v47 = vor.u32 %v509_v43, %v407_v42  ;;  %v529_v61 = vld [vmem:[%s793_s3 + $0x30] sm:$0xff] }
  0x14   :  { %213 = vmatpush.bf16.xpose.msra.mxu0 %v432_v27  ;;  %v412_v48 = vor.u32 %v508_v44, %v409_v45  ;;  %v403_v50 = vld [vmem:[%s791_s1 + $0x38] sm:$0xf]  ;;  %v507_v51 = vld [vmem:[%s791_s1 + $0x40] sm:$0xf0]  ;;  %v395_v52 = vld [vmem:[%s791_s1 + $0x30] sm:$0xf] }
  0x15   :  { %226 = vmatpush.bf16.xpose.msra.mxu1 %v436_v28  ;;  %v197_v49 = vsel %vm183_vm0, %v416_v46, 0  ;;  %v506_v53 = vld [vmem:[%s791_s1 + $0x38] sm:$0xf0]  ;;  %v505_v55 = vld [vmem:[%s791_s1 + $0x34] sm:$0xf]  ;;  %v404_v57 = vor.u32 %v507_v51, %v403_v50  ;;  %v528_v8 = vld [vmem:[%s793_s3 + $0x28] sm:$0xff] }
  0x16   :  { %239 = vmatpush.bf16.xpose.msra.mxu2 %v203_v29  ;;  %v397_v56 = vld [vmem:[%s791_s1 + $0x3c] sm:$0xf0]  ;;  %v396_v58 = vor.u32 %v506_v53, %v395_v52  ;;  %v504_v63 = vld [vmem:[%s791_s1 + $0x28] sm:$0xf0]  ;;  %v383_v0 = vld [vmem:[%s791_s1 + $0x18] sm:$0xf] }
  0x17   :  { %v400_v59 = vor.u32 %v505_v55, %v397_v56  ;;  %v194_v60 = vsel %vm183_vm0, %v404_v57, 0  ;;  %v391_v62 = vld [vmem:[%s791_s1 + $0x20] sm:$0xf]  ;;  %v503_v1 = vld [vmem:[%s791_s1 + $0x20] sm:$0xf0]  ;;  %v22_v20 = vld [vmem:[%s790_s0 + $0x8] sm:$0xff] }
  0x18   :  { %v502_v2 = vld [vmem:[%s791_s1 + $0x1c] sm:$0xf]  ;;  %v385_v3 = vld [vmem:[%s791_s1 + $0x24] sm:$0xf0]  ;;  %v392_v4 = vor.u32 %v504_v63, %v391_v62  ;;  %340 = vmatpush.bf16.xpose.msra.mxu3 %v529_v61  ;;  %v384_v5 = vor.u32 %v503_v1, %v383_v0  ;;  %v501_v10 = vld [vmem:[%s791_s1 + $0x10] sm:$0xf0]  ;;  %v25_v23 = vpack.c.bf16 %v22_v20, %v22_v20 }
  0x19   :  { %v388_v6 = vor.u32 %v502_v2, %v385_v3  ;;  %v379_v9 = vld [vmem:[%s791_s1 + $0x8] sm:$0xf]  ;;  %v371_v11 = vld [vmem:[%s791_s1] sm:$0xf]  ;;  %v500_v12 = vld [vmem:[%s791_s1 + $0x8] sm:$0xf0] }
  0x1a   :  { %v191_v7 = vsel %vm183_vm0, %v392_v4, 0  ;;  %v499_v13 = vld [vmem:[%s791_s1 + $0x4] sm:$0xf]  ;;  %v373_v14 = vld [vmem:[%s791_s1 + $0xc] sm:$0xf0]  ;;  %v380_v15 = vor.u32 %v501_v10, %v379_v9  ;;  %v372_v16 = vor.u32 %v500_v12, %v371_v11  ;;  %v526_v26 = vld [vmem:[%s793_s3 + $0x18] sm:$0xff] }
  0x1b   :  { %v376_v17 = vor.u32 %v499_v13, %v373_v14  ;;  %v21_v19 = vld [vmem:[%s790_s0] sm:$0xff]  ;;  %v23_v21 = vld [vmem:[%s790_s0 + $0x10] sm:$0xff]  ;;  %v524_v28 = vld [vmem:[%s793_s3 + $0x8] sm:$0xff]  ;;  %s564_s11 = smov [#allocation2]   ;;  %s360_s15 = sshll.u32 %s795_s5, 4  ;;  %s361_s15 = int_to_ptr.hbm [resolvable:$true] %s360_s15 }
  0x1c   :  { %214 = vmatpush.bf16.xpose.msra.mxu0 %v420_v37  ;;  %v188_v18 = vsel %vm183_vm0, %v380_v15, 0  ;;  %v24_v22 = vpack.c.bf16 %v21_v19, %v21_v19  ;;  %v26_v24 = vpack.c.bf16 %v23_v21, %v23_v21  ;;  %v527_v25 = vld [vmem:[%s793_s3 + $0x20] sm:$0xff]  ;;  %v525_v27 = vld [vmem:[%s793_s3 + $0x10] sm:$0xff]  ;;  %s358_s12 = sshll.u32 %s564_s11, 4  ;;  %s359_s12 = int_to_ptr.vmem [resolvable:$true] %s358_s12 }
  0x1d   :  { %227 = vmatpush.bf16.xpose.msra.mxu1 %v424_v38  ;;  %v532_v29 = vld [vmem:[%s792_s2] ss:$0 sm:$0xff] }
  0x1e   :  { %240 = vmatpush.bf16.xpose.msra.mxu2 %v200_v39  ;;  %v523_v31 = vld [vmem:[%s793_s3] sm:$0xff] }
  0x1f   :  { %v533_v55 = vld [vmem:[%s794_s4] ss:$0 sm:$0xff] }
  0x20   :  { %341 = vmatpush.bf16.xpose.msra.mxu3 %v528_v8 }
  0x24   :  { %215 = vmatpush.bf16.xpose.msra.mxu0 %v408_v47 }
  0x25   :  { %228 = vmatpush.bf16.xpose.msra.mxu1 %v412_v48 }
  0x26   :  { %241 = vmatpush.bf16.xpose.msra.mxu2 %v197_v49 }
  0x28   :  { %342 = vmatpush.bf16.xpose.msra.mxu3 %v527_v25 }
  0x2c   :  { %216 = vmatpush.bf16.xpose.msra.mxu0 %v396_v58 }
  0x2d   :  { %229 = vmatpush.bf16.xpose.msra.mxu1 %v400_v59 }
  0x2e   :  { %242 = vmatpush.bf16.xpose.msra.mxu2 %v194_v60 }
  0x30   :  { %343 = vmatpush.bf16.xpose.msra.mxu3 %v526_v26 }
  0x34   :  { %217 = vmatpush.bf16.xpose.msra.mxu0 %v384_v5 }
  0x35   :  { %230 = vmatpush.bf16.xpose.msra.mxu1 %v388_v6 }
  0x36   :  { %243 = vmatpush.bf16.xpose.msra.mxu2 %v191_v7 }
  0x38   :  { %344 = vmatpush.bf16.xpose.msra.mxu3 %v525_v27 }
  0x3c   :  { %218 = vmatpush.bf16.xpose.msra.mxu0 %v372_v16 }
  0x3d   :  { %231 = vmatpush.bf16.xpose.msra.mxu1 %v376_v17 }
  0x3e   :  { %244 = vmatpush.bf16.xpose.msra.mxu2 %v188_v18 }
  0x40   :  { %345 = vmatpush.bf16.xpose.msra.mxu3 %v524_v28 }
  0x43   :  { %219 = vmatmul.bf16.vlgmr.msra.gmra.mxu0 %v24_v22 }
  0x44   :  { %232 = vmatmul.bf16.vlgmr.msra.gmra.mxu1 %v25_v23 }
  0x45   :  { %465 = vmatmul.msk.bf16.vlgmr.msra.gmra.mxu2 %vm183_vm0, %v26_v24 }
  0x48   :  { %346 = vmatpush.bf16.xpose.msra.mxu3 %v523_v31 }
  0xc0   :  { %v220_v30 = vpop.f32.mrf.mxu0 }
  0xc1   :  { %v221_v32 = vadd.f32 %v532_v29, %v220_v30  ;;  %v233_v33 = vpop.f32.mrf.mxu1 }
  0xc3   :  { %v234_v34 = vadd.f32 %v233_v33, %v221_v32 }
  0xc8   :  { %v246_v35 = vpop.f32.mrf.mxu2  ;;  %v222_v36 = vpop.f32.mrf.mxu0 }
  0xc9   :  { %v247_v37 = vadd.f32 %v246_v35, %v234_v34  ;;  %v235_v38 = vpop.f32.mrf.mxu1 }
  0xcb   :  { %v466_v39 = vmul.f32 -1.442695, %v247_v37 }
  0xcd   :  { %534 = vpow2.f32 %v466_v39 }
  0xd0   :  { %v248_v40 = vpop.f32.mrf.mxu2 }
  0xd3   :  { %v535_v41 = vpop.eup %534 }
  0xd4   :  { %v253_v42 = vadd.f32 1.0, %v535_v41 }
  0xd6   :  { %536 = vrcp.f32 %v253_v42  ;;  %v265_v46 = vand.u32 2147483648, %v253_v42  ;;  %v263_v48 = vand.u32 2147483647, %v253_v42  ;;  %vm259_vm2 = vweird.f32 %v253_v42 }
  0xd8   :  { %v266_v50 = vor.u32 1.1754944e-38, %v265_v46  ;;  %vm264_vm4 = vcmp.eq.f32.partialorder %v263_v48, 8.507059e+37 }
  0xdc   :  { %v537_v43 = vpop.eup %536 }
  0xdd   :  { %v255_v44 = vmul.f32 %v537_v43, %v253_v42  ;;  %vm260_vm1 = vweird.f32 %v537_v43 }
  0xde   :  { %vm261_vm3 = vmor %vm259_vm2, %vm260_vm1 }
  0xdf   :  { %v256_v45 = vsub.f32 1.0, %v255_v44 }
  0xe1   :  { %v257_v47 = vmul.f32 %v537_v43, %v256_v45 }
  0xe3   :  { %v258_v49 = vadd.f32 %v537_v43, %v257_v47 }
  0xe5   :  { %v262_v51 = vsel %vm261_vm3, %v537_v43, %v258_v49 }
  0xe6   :  { %v267_v52 = vsel %vm264_vm4, %v266_v50, %v262_v51 }
  0xe7   :  { %v269_v53 = vmul.f32 %v267_v52, %v247_v37 }
  0xe9   :  { %v270_v54 = vpack.c.bf16 %v269_v53, %v269_v53 }
  0xeb   :  { %347 = vmatmul.bf16.vlgmr.msra.gmra.mxu3 %v270_v54 }
 0x16e   :  { %v348_v56 = vpop.f32.mrf.mxu3 }
 0x16f   :  { %v349_v57 = vadd.f32 %v533_v55, %v348_v56 }
 0x171   :  { %352 = vst [vmem:[#allocation2] sm:$0xff] %v349_v57 }
 0x172   :  { %363 = dma.vmem_to_hbm [thread:$0]  %s359_s12, 128, %s361_s15, [#allocation3]  }
 0x176   :  { %v350_v58 = vpop.f32.mrf.mxu3 }
 0x177   :  { %562 = dma.done.wait [#allocation3], 128  }
 0x178   :  { %563 = vsyncadd [#allocation3], 4294967168 }
 0x179   :  { %368 = vsyncpa [#allocation3], 1 }

</bundles_post_ra>
